<compile_context>
chip_gen: v6e
topology: v6e:2x2x1
jax: 0.10.0
libtpu: 0.0.40
codegen_flags: <defaults>
</compile_context>

<pallas_src>
import jax
import jax.numpy as jnp
import numpy as np
from jax.experimental import pallas as pl
from jax.experimental.pallas import tpu as pltpu

# --- model dimensions (from the PyTorch module) ---
STATE_SIZE = 16
ACTION_SIZE = 4
FCS1, FCS2, FCS3, FC4 = 50, 100, 4, 24
LN_EPS = 1e-5  # PyTorch nn.LayerNorm default

# --- packed-parameter layout (feature-major: weights stored transposed) -----
# Weight slab (128, 512) f32; each Wᵀ in its own 128-lane-aligned column
# segment, rows starting at 0 (static, tile-aligned slices inside the kernel).
CAT_IN = STATE_SIZE + ACTION_SIZE          # 20  (concat [states, actions])
A4_ROW = 56                                 # 8-aligned row for the W4aᵀ block
CAT_ROWS = A4_ROW + FC4                     # 80  (rows 50:56 are zero padding)
WCAT_COL, W2_COL, W3_COL, W4S_COL = 0, 128, 256, 384
W_ROWS, W_COLS = 128, 512
# Vector slab (128, 16) f32; one parameter vector per COLUMN (feature on the
# sublane axis so it broadcasts over the lane/batch axis inside the kernel).
(COL_B1, COL_G1, COL_BE1,
 COL_B2, COL_G2, COL_BE2,
 COL_B3, COL_G3, COL_BE3,
 COL_B4, COL_G4, COL_BE4,
 COL_B5, COL_W5) = range(14)
V_ROWS, V_COLS = 128, 16


# ----------------------------------------------------------------------------
# Pallas kernel: full Critic forward for one batch tile (batch on lanes).
# ----------------------------------------------------------------------------
def _critic_kernel(x_ref, w_ref, v_ref, out_ref):
    def col(c, n):
        # static (n, 1) column slice of the packed vector slab — broadcasts
        # over the lane (batch) axis.
        return v_ref[:n, c:c + 1]

    def ln_relu(x, gamma, beta):
        # LayerNorm over the feature (sublane) axis + ReLU.  Centered two-pass
        # variance (same form as PyTorch nn.LayerNorm).
        n = x.shape[0]
        inv_n = 1.0 / n
        mu = jnp.sum(x, axis=0, keepdims=True) * inv_n          # (1, bb)
        xc = x - mu
        var = jnp.sum(xc * xc, axis=0, keepdims=True) * inv_n   # (1, bb)
        y = xc * jax.lax.rsqrt(var + LN_EPS)
        return jnp.maximum(y * gamma + beta, 0.0)

    def mm(a, b):
        return jnp.dot(a, b, preferred_element_type=jnp.float32)

    x = x_ref[...]                                               # (20, bb)

    # static, lane-tile-aligned views of the packed weight slab
    w_cat = w_ref[:CAT_ROWS, WCAT_COL:WCAT_COL + CAT_IN]         # (80, 20)
    w2t = w_ref[:FCS2, W2_COL:W2_COL + FCS1]                     # (100, 50)
    w3t = w_ref[:FCS3, W3_COL:W3_COL + FCS2]                     # (4, 100)
    w4st = w_ref[:FC4, W4S_COL:W4S_COL + FCS3]                   # (24, 4)

    # fused first matmul: rows 0:50 = W1ᵀ·sᵀ, rows 56:80 = W4aᵀ·aᵀ
    y0 = mm(w_cat, x)                                            # (80, bb)
    a4 = y0[A4_ROW:A4_ROW + FC4, :]                              # (24, bb)

    # fcs1: Linear(state_size, 50) + LN + ReLU
    h1 = ln_relu(y0[:FCS1, :] + col(COL_B1, FCS1),
                 col(COL_G1, FCS1), col(COL_BE1, FCS1))          # (50, bb)
    # fcs2: Linear(50, 100) + LN + ReLU
    h2 = ln_relu(mm(w2t, h1) + col(COL_B2, FCS2),
                 col(COL_G2, FCS2), col(COL_BE2, FCS2))          # (100, bb)
    # fcs3: Linear(100, 4) + LN + ReLU
    h3 = ln_relu(mm(w3t, h2) + col(COL_B3, FCS3),
                 col(COL_G3, FCS3), col(COL_BE3, FCS3))          # (4, bb)
    # fc4: Linear(4 + action_size, 24) on concat(h3, actions) + LN + ReLU
    # (the action contribution a4 was produced by the fused first matmul)
    z4 = mm(w4st, h3) + a4 + col(COL_B4, FC4)                    # (24, bb)
    h4 = ln_relu(z4, col(COL_G4, FC4), col(COL_BE4, FC4))        # (24, bb)
    # fc5: Linear(24, 1) — VPU multiply + sublane reduce; result is a
    # lane-dense (1, bb) row, stored with an unmasked vst.
    w5c = col(COL_W5, FC4)                                       # (24, 1)
    b5 = v_ref[0:1, COL_B5:COL_B5 + 1]                           # (1, 1)
    out_ref[...] = jnp.sum(h4 * w5c, axis=0, keepdims=True) + b5


# ----------------------------------------------------------------------------
# Wrapper
# ----------------------------------------------------------------------------
def critic_forward(states, actions, wslab, vecs, *, block_b=None):
    """Critic forward.  states (B, state_size), actions (B, action_size).

    block_b=None -> single invocation, everything in VMEM (small batches).
    block_b=TB   -> batch-tiled grid (TB % 128 == 0); params stay VMEM-resident
                    (constant index_map), batch axis marked "parallel" so the
                    grid steps shard across v7x's two TensorCores.  Use
                    block_b = B // 2 (or B // 4) so the grid has >= 2 steps.
    """
    B = states.shape[0]
    # Feature-major input: batch on the lane axis, concat folded in.
    # TODO(synk): a real DDPG training loop should store the replay buffer
    # feature-major ((20, capacity)) so this transpose+concat disappears.
    x_t = jnp.concatenate([states, actions], axis=1).T           # (20, B)
    out_shape = jax.ShapeDtypeStruct((1, B), jnp.float32)

    if block_b is None or block_b >= B:
        # Small batch: no grid (each grid step costs ~0.35 us fixed overhead).
        vmem = pl.BlockSpec(memory_space=pltpu.MemorySpace.VMEM)
        q = pl.pallas_call(
            _critic_kernel,
            out_shape=out_shape,
            in_specs=[vmem, vmem, vmem],
            out_specs=vmem,
        )(x_t, wslab, vecs)
        return q.reshape(B, 1)

    assert B % block_b == 0, "batch must be a multiple of block_b"
    assert block_b % 128 == 0, "block_b must be a multiple of 128 (lane tiling)"
    q = pl.pallas_call(
        _critic_kernel,
        out_shape=out_shape,
        grid_spec=pltpu.PrefetchScalarGridSpec(
            num_scalar_prefetch=0,
            grid=(B // block_b,),
            in_specs=[
                pl.BlockSpec((CAT_IN, block_b), lambda i: (0, i)),
                # params: constant block index -> stay VMEM-resident
                pl.BlockSpec((W_ROWS, W_COLS), lambda i: (0, 0)),
                pl.BlockSpec((V_ROWS, V_COLS), lambda i: (0, 0)),
            ],
            out_specs=pl.BlockSpec((1, block_b), lambda i: (0, i)),
        ),
        compiler_params=pltpu.CompilerParams(
            dimension_semantics=("parallel",)),
    )(x_t, wslab, vecs)
    return q.reshape(B, 1)


# ----------------------------------------------------------------------------
# Deterministic parameter construction (mirrors init_weights for Linear:
# uniform(-sqrt(6/(fan_in+fan_out)), +), bias = 0; LayerNorm: gamma=1, beta=0)
# ----------------------------------------------------------------------------
def make_params(key):
    def linear_w(key, fan_in, fan_out):
        bound = np.sqrt(6.0 / (fan_in + fan_out))
        return jax.random.uniform(key, (fan_in, fan_out), jnp.float32,
                                  minval=-bound, maxval=bound)

    keys = jax.random.split(key, 5)
    w1 = linear_w(keys[0], STATE_SIZE, FCS1)
    w2 = linear_w(keys[1], FCS1, FCS2)
    w3 = linear_w(keys[2], FCS2, FCS3)
    w4_full = linear_w(keys[3], FCS3 + ACTION_SIZE, FC4)
    w4s, w4a = w4_full[:FCS3], w4_full[FCS3:]
    w5 = linear_w(keys[4], FC4, 1)

    def bias(n): return jnp.zeros((1, n), jnp.float32)
    def gamma(n): return jnp.ones((1, n), jnp.float32)
    def beta(n): return jnp.zeros((1, n), jnp.float32)

    return (
        w1, bias(FCS1), gamma(FCS1), beta(FCS1),
        w2, bias(FCS2), gamma(FCS2), beta(FCS2),
        w3, bias(FCS3), gamma(FCS3), beta(FCS3),
        w4s, w4a, bias(FC4), gamma(FC4), beta(FC4),
        w5, bias(1),
    )


def pack_params(params):
    """Pack the 19 small tensors into two lane-aligned slabs (done once).

    Weights are stored TRANSPOSED (out_features, in_features) because the
    kernel computes feature-major Wᵀ·X.  W1ᵀ and W4aᵀ are packed as a
    block-diagonal (80, 20) matrix so the first matmul also produces the
    action contribution of fc4 (concat folded into the weights).
    """
    (w1, b1, g1, be1, w2, b2, g2, be2, w3, b3, g3, be3,
     w4s, w4a, b4, g4, be4, w5, b5) = params

    wslab = jnp.zeros((W_ROWS, W_COLS), jnp.float32)
    # block-diagonal [[W1ᵀ, 0], [0, W4aᵀ]]; W4aᵀ starts at an 8-aligned row
    wslab = wslab.at[:FCS1, WCAT_COL:WCAT_COL + STATE_SIZE].set(w1.T)
    wslab = wslab.at[A4_ROW:A4_ROW + FC4,
                     WCAT_COL + STATE_SIZE:WCAT_COL + CAT_IN].set(w4a.T)
    wslab = wslab.at[:FCS2, W2_COL:W2_COL + FCS1].set(w2.T)
    wslab = wslab.at[:FCS3, W3_COL:W3_COL + FCS2].set(w3.T)
    wslab = wslab.at[:FC4, W4S_COL:W4S_COL + FCS3].set(w4s.T)

    vecs = jnp.zeros((V_ROWS, V_COLS), jnp.float32)
    vecs = vecs.at[:FCS1, COL_B1].set(b1[0])
    vecs = vecs.at[:FCS1, COL_G1].set(g1[0])
    vecs = vecs.at[:FCS1, COL_BE1].set(be1[0])
    vecs = vecs.at[:FCS2, COL_B2].set(b2[0])
    vecs = vecs.at[:FCS2, COL_G2].set(g2[0])
    vecs = vecs.at[:FCS2, COL_BE2].set(be2[0])
    vecs = vecs.at[:FCS3, COL_B3].set(b3[0])
    vecs = vecs.at[:FCS3, COL_G3].set(g3[0])
    vecs = vecs.at[:FCS3, COL_BE3].set(be3[0])
    vecs = vecs.at[:FC4, COL_B4].set(b4[0])
    vecs = vecs.at[:FC4, COL_G4].set(g4[0])
    vecs = vecs.at[:FC4, COL_BE4].set(be4[0])
    vecs = vecs.at[0, COL_B5].set(b5[0, 0])
    vecs = vecs.at[:FC4, COL_W5].set(w5[:, 0])
    return wslab, vecs


# ----------------------------------------------------------------------------
# Pure-JAX reference (for correctness check)
# ----------------------------------------------------------------------------
def critic_reference(states, actions, params):
    (w1, b1, g1, be1, w2, b2, g2, be2, w3, b3, g3, be3,
     w4s, w4a, b4, g4, be4, w5, b5) = params

    def ln_relu(x, g, b):
        mu = jnp.mean(x, axis=-1, keepdims=True)
        var = jnp.mean((x - mu) ** 2, axis=-1, keepdims=True)
        return jnp.maximum((x - mu) / jnp.sqrt(var + LN_EPS) * g + b, 0.0)

    h1 = ln_relu(states @ w1 + b1, g1, be1)
    h2 = ln_relu(h1 @ w2 + b2, g2, be2)
    h3 = ln_relu(h2 @ w3 + b3, g3, be3)
    x = jnp.concatenate([h3, actions], axis=1)
    w4 = jnp.concatenate([w4s, w4a], axis=0)
    h4 = ln_relu(x @ w4 + b4, g4, be4)
    return h4 @ w5 + b5


if __name__ == "__main__":
    key = jax.random.PRNGKey(0)
    k_params, k_s, k_a = jax.random.split(key, 3)

    params = make_params(k_params)
    wslab, vecs = pack_params(params)

    # --- small batch: single-invocation (no grid) path ---
    B = 8
    states = jax.random.normal(k_s, (B, STATE_SIZE), jnp.float32)
    actions = jax.random.normal(k_a, (B, ACTION_SIZE), jnp.float32)
    q = jax.block_until_ready(critic_forward(states, actions, wslab, vecs))
    q_ref = critic_reference(states, actions, params)
    assert q.shape == (B, 1), q.shape
    np.testing.assert_allclose(np.asarray(q), np.asarray(q_ref),
                               rtol=1e-4, atol=1e-4)

    # --- replay-buffer batch: batch-tiled grid path ---
    #   block_b = B // 2 -> 2 grid steps so "parallel" shards across both
    #   TensorCores on v7x; params stay VMEM-resident across steps.
    BL, TB = 1024, 512
    k_s2, k_a2 = jax.random.split(jax.random.PRNGKey(1), 2)
    states_l = jax.random.normal(k_s2, (BL, STATE_SIZE), jnp.float32)
    actions_l = jax.random.normal(k_a2, (BL, ACTION_SIZE), jnp.float32)
    q_l = jax.block_until_ready(
        critic_forward(states_l, actions_l, wslab, vecs, block_b=TB))
    q_l_ref = critic_reference(states_l, actions_l, params)
    assert q_l.shape == (BL, 1), q_l.shape
    np.testing.assert_allclose(np.asarray(q_l), np.asarray(q_l_ref),
                               rtol=1e-4, atol=1e-4)

    print("KERNEL_OK")
</pallas_src>

<mosaic_0001>
module attributes {stable_mosaic.version = 11 : i64} {
  func.func @_critic_kernel(%arg0: memref<20x8xf32, #tpu.memory_space<vmem>>, %arg1: memref<128x512xf32, #tpu.memory_space<vmem>>, %arg2: memref<128x16xf32, #tpu.memory_space<vmem>>, %arg3: memref<1x8xf32, #tpu.memory_space<vmem>>) attributes {dimension_semantics = [], scalar_prefetch = 0 : i64, scratch_operands = 0 : i64, tpu.core_type = #tpu.core_type<tc>} {
    %c0 = arith.constant 0 : index
    %c0_0 = arith.constant 0 : index
    %0 = vector.load %arg0[%c0, %c0_0] : memref<20x8xf32, #tpu.memory_space<vmem>>, vector<20x8xf32>
    %c0_1 = arith.constant 0 : index
    %c0_2 = arith.constant 0 : index
    %1 = vector.load %arg1[%c0_1, %c0_2] : memref<128x512xf32, #tpu.memory_space<vmem>>, vector<80x20xf32>
    %c0_3 = arith.constant 0 : index
    %c128 = arith.constant 128 : index
    %2 = vector.load %arg1[%c0_3, %c128] : memref<128x512xf32, #tpu.memory_space<vmem>>, vector<100x50xf32>
    %c0_4 = arith.constant 0 : index
    %c256 = arith.constant 256 : index
    %3 = vector.load %arg1[%c0_4, %c256] : memref<128x512xf32, #tpu.memory_space<vmem>>, vector<4x100xf32>
    %c0_5 = arith.constant 0 : index
    %c384 = arith.constant 384 : index
    %4 = vector.load %arg1[%c0_5, %c384] : memref<128x512xf32, #tpu.memory_space<vmem>>, vector<24x4xf32>
    %cst = arith.constant dense<0.000000e+00> : vector<80x8xf32>
    %5 = tpu.matmul %1, %0, %cst {dimension_numbers = #tpu.dot_dimension_numbers<[1], [0], [0], [1], [0, 0, 1, 1], [], []>} : vector<80x20xf32>, vector<20x8xf32>, vector<80x8xf32> -> vector<80x8xf32>
    %6 = vector.extract_strided_slice %5 {offsets = [56, 0], sizes = [24, 8], strides = [1, 1]} : vector<80x8xf32> to vector<24x8xf32>
    %7 = vector.extract_strided_slice %5 {offsets = [0, 0], sizes = [50, 8], strides = [1, 1]} : vector<80x8xf32> to vector<50x8xf32>
    %c0_6 = arith.constant 0 : index
    %c0_7 = arith.constant 0 : index
    %8 = vector.load %arg2[%c0_6, %c0_7] : memref<128x16xf32, #tpu.memory_space<vmem>>, vector<50x1xf32>
    %9 = vector.broadcast %8 : vector<50x1xf32> to vector<50x8xf32>
    %10 = arith.addf %7, %9 : vector<50x8xf32>
    %c0_8 = arith.constant 0 : index
    %c1 = arith.constant 1 : index
    %11 = vector.load %arg2[%c0_8, %c1] : memref<128x16xf32, #tpu.memory_space<vmem>>, vector<50x1xf32>
    %c0_9 = arith.constant 0 : index
    %c2 = arith.constant 2 : index
    %12 = vector.load %arg2[%c0_9, %c2] : memref<128x16xf32, #tpu.memory_space<vmem>>, vector<50x1xf32>
    %cst_10 = arith.constant dense<0.000000e+00> : vector<8xf32>
    %13 = vector.multi_reduction <add>, %10, %cst_10 [0] : vector<50x8xf32> to vector<8xf32>
    %14 = vector.shape_cast %13 : vector<8xf32> to vector<1x8xf32>
    %cst_11 = arith.constant 2.000000e-02 : f32
    %15 = vector.broadcast %cst_11 : f32 to vector<1x8xf32>
    %16 = arith.mulf %14, %15 : vector<1x8xf32>
    %17 = vector.broadcast %16 : vector<1x8xf32> to vector<50x8xf32>
    %18 = arith.subf %10, %17 : vector<50x8xf32>
    %19 = arith.mulf %18, %18 : vector<50x8xf32>
    %cst_12 = arith.constant dense<0.000000e+00> : vector<8xf32>
    %20 = vector.multi_reduction <add>, %19, %cst_12 [0] : vector<50x8xf32> to vector<8xf32>
    %21 = vector.shape_cast %20 : vector<8xf32> to vector<1x8xf32>
    %cst_13 = arith.constant 2.000000e-02 : f32
    %22 = vector.broadcast %cst_13 : f32 to vector<1x8xf32>
    %23 = arith.mulf %21, %22 : vector<1x8xf32>
    %cst_14 = arith.constant 9.99999974E-6 : f32
    %24 = vector.broadcast %cst_14 : f32 to vector<1x8xf32>
    %25 = arith.addf %23, %24 : vector<1x8xf32>
    %26 = math.rsqrt %25 : vector<1x8xf32>
    %27 = vector.broadcast %26 : vector<1x8xf32> to vector<50x8xf32>
    %28 = arith.mulf %18, %27 : vector<50x8xf32>
    %29 = vector.broadcast %11 : vector<50x1xf32> to vector<50x8xf32>
    %30 = arith.mulf %28, %29 : vector<50x8xf32>
    %31 = vector.broadcast %12 : vector<50x1xf32> to vector<50x8xf32>
    %32 = arith.addf %30, %31 : vector<50x8xf32>
    %cst_15 = arith.constant 0.000000e+00 : f32
    %33 = vector.broadcast %cst_15 : f32 to vector<50x8xf32>
    %34 = arith.maximumf %32, %33 : vector<50x8xf32>
    %cst_16 = arith.constant dense<0.000000e+00> : vector<100x8xf32>
    %35 = tpu.matmul %2, %34, %cst_16 {dimension_numbers = #tpu.dot_dimension_numbers<[1], [0], [0], [1], [0, 0, 1, 1], [], []>} : vector<100x50xf32>, vector<50x8xf32>, vector<100x8xf32> -> vector<100x8xf32>
    %c0_17 = arith.constant 0 : index
    %c3 = arith.constant 3 : index
    %36 = vector.load %arg2[%c0_17, %c3] : memref<128x16xf32, #tpu.memory_space<vmem>>, vector<100x1xf32>
    %37 = vector.broadcast %36 : vector<100x1xf32> to vector<100x8xf32>
    %38 = arith.addf %35, %37 : vector<100x8xf32>
    %c0_18 = arith.constant 0 : index
    %c4 = arith.constant 4 : index
    %39 = vector.load %arg2[%c0_18, %c4] : memref<128x16xf32, #tpu.memory_space<vmem>>, vector<100x1xf32>
    %c0_19 = arith.constant 0 : index
    %c5 = arith.constant 5 : index
    %40 = vector.load %arg2[%c0_19, %c5] : memref<128x16xf32, #tpu.memory_space<vmem>>, vector<100x1xf32>
    %cst_20 = arith.constant dense<0.000000e+00> : vector<8xf32>
    %41 = vector.multi_reduction <add>, %38, %cst_20 [0] : vector<100x8xf32> to vector<8xf32>
    %42 = vector.shape_cast %41 : vector<8xf32> to vector<1x8xf32>
    %cst_21 = arith.constant 0.00999999977 : f32
    %43 = vector.broadcast %cst_21 : f32 to vector<1x8xf32>
    %44 = arith.mulf %42, %43 : vector<1x8xf32>
    %45 = vector.broadcast %44 : vector<1x8xf32> to vector<100x8xf32>
    %46 = arith.subf %38, %45 : vector<100x8xf32>
    %47 = arith.mulf %46, %46 : vector<100x8xf32>
    %cst_22 = arith.constant dense<0.000000e+00> : vector<8xf32>
    %48 = vector.multi_reduction <add>, %47, %cst_22 [0] : vector<100x8xf32> to vector<8xf32>
    %49 = vector.shape_cast %48 : vector<8xf32> to vector<1x8xf32>
    %cst_23 = arith.constant 0.00999999977 : f32
    %50 = vector.broadcast %cst_23 : f32 to vector<1x8xf32>
    %51 = arith.mulf %49, %50 : vector<1x8xf32>
    %cst_24 = arith.constant 9.99999974E-6 : f32
    %52 = vector.broadcast %cst_24 : f32 to vector<1x8xf32>
    %53 = arith.addf %51, %52 : vector<1x8xf32>
    %54 = math.rsqrt %53 : vector<1x8xf32>
    %55 = vector.broadcast %54 : vector<1x8xf32> to vector<100x8xf32>
    %56 = arith.mulf %46, %55 : vector<100x8xf32>
    %57 = vector.broadcast %39 : vector<100x1xf32> to vector<100x8xf32>
    %58 = arith.mulf %56, %57 : vector<100x8xf32>
    %59 = vector.broadcast %40 : vector<100x1xf32> to vector<100x8xf32>
    %60 = arith.addf %58, %59 : vector<100x8xf32>
    %cst_25 = arith.constant 0.000000e+00 : f32
    %61 = vector.broadcast %cst_25 : f32 to vector<100x8xf32>
    %62 = arith.maximumf %60, %61 : vector<100x8xf32>
    %cst_26 = arith.constant dense<0.000000e+00> : vector<4x8xf32>
    %63 = tpu.matmul %3, %62, %cst_26 {dimension_numbers = #tpu.dot_dimension_numbers<[1], [0], [0], [1], [0, 0, 1, 1], [], []>} : vector<4x100xf32>, vector<100x8xf32>, vector<4x8xf32> -> vector<4x8xf32>
    %c0_27 = arith.constant 0 : index
    %c6 = arith.constant 6 : index
    %64 = vector.load %arg2[%c0_27, %c6] : memref<128x16xf32, #tpu.memory_space<vmem>>, vector<4x1xf32>
    %65 = vector.broadcast %64 : vector<4x1xf32> to vector<4x8xf32>
    %66 = arith.addf %63, %65 : vector<4x8xf32>
    %c0_28 = arith.constant 0 : index
    %c7 = arith.constant 7 : index
    %67 = vector.load %arg2[%c0_28, %c7] : memref<128x16xf32, #tpu.memory_space<vmem>>, vector<4x1xf32>
    %c0_29 = arith.constant 0 : index
    %c8 = arith.constant 8 : index
    %68 = vector.load %arg2[%c0_29, %c8] : memref<128x16xf32, #tpu.memory_space<vmem>>, vector<4x1xf32>
    %cst_30 = arith.constant dense<0.000000e+00> : vector<8xf32>
    %69 = vector.multi_reduction <add>, %66, %cst_30 [0] : vector<4x8xf32> to vector<8xf32>
    %70 = vector.shape_cast %69 : vector<8xf32> to vector<1x8xf32>
    %cst_31 = arith.constant 2.500000e-01 : f32
    %71 = vector.broadcast %cst_31 : f32 to vector<1x8xf32>
    %72 = arith.mulf %70, %71 : vector<1x8xf32>
    %73 = vector.broadcast %72 : vector<1x8xf32> to vector<4x8xf32>
    %74 = arith.subf %66, %73 : vector<4x8xf32>
    %75 = arith.mulf %74, %74 : vector<4x8xf32>
    %cst_32 = arith.constant dense<0.000000e+00> : vector<8xf32>
    %76 = vector.multi_reduction <add>, %75, %cst_32 [0] : vector<4x8xf32> to vector<8xf32>
    %77 = vector.shape_cast %76 : vector<8xf32> to vector<1x8xf32>
    %cst_33 = arith.constant 2.500000e-01 : f32
    %78 = vector.broadcast %cst_33 : f32 to vector<1x8xf32>
    %79 = arith.mulf %77, %78 : vector<1x8xf32>
    %cst_34 = arith.constant 9.99999974E-6 : f32
    %80 = vector.broadcast %cst_34 : f32 to vector<1x8xf32>
    %81 = arith.addf %79, %80 : vector<1x8xf32>
    %82 = math.rsqrt %81 : vector<1x8xf32>
    %83 = vector.broadcast %82 : vector<1x8xf32> to vector<4x8xf32>
    %84 = arith.mulf %74, %83 : vector<4x8xf32>
    %85 = vector.broadcast %67 : vector<4x1xf32> to vector<4x8xf32>
    %86 = arith.mulf %84, %85 : vector<4x8xf32>
    %87 = vector.broadcast %68 : vector<4x1xf32> to vector<4x8xf32>
    %88 = arith.addf %86, %87 : vector<4x8xf32>
    %cst_35 = arith.constant 0.000000e+00 : f32
    %89 = vector.broadcast %cst_35 : f32 to vector<4x8xf32>
    %90 = arith.maximumf %88, %89 : vector<4x8xf32>
    %cst_36 = arith.constant dense<0.000000e+00> : vector<24x8xf32>
    %91 = tpu.matmul %4, %90, %cst_36 {dimension_numbers = #tpu.dot_dimension_numbers<[1], [0], [0], [1], [0, 0, 1, 1], [], []>} : vector<24x4xf32>, vector<4x8xf32>, vector<24x8xf32> -> vector<24x8xf32>
    %92 = arith.addf %91, %6 : vector<24x8xf32>
    %c0_37 = arith.constant 0 : index
    %c9 = arith.constant 9 : index
    %93 = vector.load %arg2[%c0_37, %c9] : memref<128x16xf32, #tpu.memory_space<vmem>>, vector<24x1xf32>
    %94 = vector.broadcast %93 : vector<24x1xf32> to vector<24x8xf32>
    %95 = arith.addf %92, %94 : vector<24x8xf32>
    %c0_38 = arith.constant 0 : index
    %c10 = arith.constant 10 : index
    %96 = vector.load %arg2[%c0_38, %c10] : memref<128x16xf32, #tpu.memory_space<vmem>>, vector<24x1xf32>
    %c0_39 = arith.constant 0 : index
    %c11 = arith.constant 11 : index
    %97 = vector.load %arg2[%c0_39, %c11] : memref<128x16xf32, #tpu.memory_space<vmem>>, vector<24x1xf32>
    %cst_40 = arith.constant dense<0.000000e+00> : vector<8xf32>
    %98 = vector.multi_reduction <add>, %95, %cst_40 [0] : vector<24x8xf32> to vector<8xf32>
    %99 = vector.shape_cast %98 : vector<8xf32> to vector<1x8xf32>
    %cst_41 = arith.constant 0.0416666679 : f32
    %100 = vector.broadcast %cst_41 : f32 to vector<1x8xf32>
    %101 = arith.mulf %99, %100 : vector<1x8xf32>
    %102 = vector.broadcast %101 : vector<1x8xf32> to vector<24x8xf32>
    %103 = arith.subf %95, %102 : vector<24x8xf32>
    %104 = arith.mulf %103, %103 : vector<24x8xf32>
    %cst_42 = arith.constant dense<0.000000e+00> : vector<8xf32>
    %105 = vector.multi_reduction <add>, %104, %cst_42 [0] : vector<24x8xf32> to vector<8xf32>
    %106 = vector.shape_cast %105 : vector<8xf32> to vector<1x8xf32>
    %cst_43 = arith.constant 0.0416666679 : f32
    %107 = vector.broadcast %cst_43 : f32 to vector<1x8xf32>
    %108 = arith.mulf %106, %107 : vector<1x8xf32>
    %cst_44 = arith.constant 9.99999974E-6 : f32
    %109 = vector.broadcast %cst_44 : f32 to vector<1x8xf32>
    %110 = arith.addf %108, %109 : vector<1x8xf32>
    %111 = math.rsqrt %110 : vector<1x8xf32>
    %112 = vector.broadcast %111 : vector<1x8xf32> to vector<24x8xf32>
    %113 = arith.mulf %103, %112 : vector<24x8xf32>
    %114 = vector.broadcast %96 : vector<24x1xf32> to vector<24x8xf32>
    %115 = arith.mulf %113, %114 : vector<24x8xf32>
    %116 = vector.broadcast %97 : vector<24x1xf32> to vector<24x8xf32>
    %117 = arith.addf %115, %116 : vector<24x8xf32>
    %cst_45 = arith.constant 0.000000e+00 : f32
    %118 = vector.broadcast %cst_45 : f32 to vector<24x8xf32>
    %119 = arith.maximumf %117, %118 : vector<24x8xf32>
    %c0_46 = arith.constant 0 : index
    %c13 = arith.constant 13 : index
    %120 = vector.load %arg2[%c0_46, %c13] : memref<128x16xf32, #tpu.memory_space<vmem>>, vector<24x1xf32>
    %c0_47 = arith.constant 0 : index
    %c12 = arith.constant 12 : index
    %121 = vector.load %arg2[%c0_47, %c12] : memref<128x16xf32, #tpu.memory_space<vmem>>, vector<1x1xf32>
    %122 = vector.broadcast %120 : vector<24x1xf32> to vector<24x8xf32>
    %123 = arith.mulf %119, %122 : vector<24x8xf32>
    %cst_48 = arith.constant dense<0.000000e+00> : vector<8xf32>
    %124 = vector.multi_reduction <add>, %123, %cst_48 [0] : vector<24x8xf32> to vector<8xf32>
    %125 = vector.shape_cast %124 : vector<8xf32> to vector<1x8xf32>
    %126 = vector.broadcast %121 : vector<1x1xf32> to vector<1x8xf32>
    %127 = arith.addf %125, %126 : vector<1x8xf32>
    %c0_49 = arith.constant 0 : index
    %c0_50 = arith.constant 0 : index
    %128 = vector.load %arg3[%c0_49, %c0_50] : memref<1x8xf32, #tpu.memory_space<vmem>>, vector<1x8xf32>
    tpu.vector_store %arg3[%c0_49, %c0_50], %127 {strides = array<i32>} : memref<1x8xf32, #tpu.memory_space<vmem>>, vector<1x8xf32>,
    return
  }
}

</mosaic_0001>

<bundles_post_ra>
// kernel: tpu_custom_call.1
= control target key start
LH: loop header
LB: loop body
LE: loop exit
PB: predicated region body
PF: predicated region fallthrough
CT: control target
= control target key end

     0   :  { %8 = vsyncpa [#allocation3], 0  ;;  %s2018_s0 = inlined_call_operand.vmem [shape: f32[20,8], index: 0, kind: input, shape index: {}]   ;;  %s2019_s1 = inlined_call_operand.hbm [shape: f32[128,512], index: 1, kind: input, shape index: {}]   ;;  %s2020_s2 = inlined_call_operand.vmem [shape: f32[128,16], index: 2, kind: input, shape index: {}]   ;;  %s2021_s3 = inlined_call_operand.hbm [shape: f32[1,8], index: 3, kind: output, shape index: {}]  }
   0x1   :  { %9 = vsyncpa [#allocation4], 0  ;;  %s1555_s12 = smov [#allocation2]  }
   0x2   :  { %s17_s13 = sshll.u32 %s1555_s12, 4  ;;  %s18_s13 = int_to_ptr.vmem [resolvable:$true] %s17_s13 }
   0x3   :  { %s1519_s14 = scalar_lea.vmem %s18_s13, 8192  ;;  %p1524_p1 = scmp.lt.s32.totalorder %s18_s13, %s18_s13 }
   0x4   :  { %p1520_p0 = scmp.ne.s32.totalorder %s18_s13, %s1519_s14  ;;  %p1525_p2 = scmp.lt.s32.totalorder %s1519_s14, %s1519_s14 }
   0x6   :  { %p1526_p3 = por %p1525_p2, %p1524_p1 }
   0x8   :  { %p1527_p4 = pnand %p1526_p3, %p1520_p0 }
   0xa   :  { %1530 = shalt.err (!%p1527_p4)
}
   0xb   :  { %s1556_s15 = smov 512   ;;  %s1557_s16 = smov 32  }
   0xc   :  { %23 = dma.hbm_to_vmem [thread:$0]  %s2019_s1, 8192, %s18_s13, [#allocation3], %s1556_s15, %s1556_s15, %s1557_s16  }
   0xd   :  { %1551 = dma.done.wait [#allocation3], 8192  }
   0xe   :  { %1552 = vsyncadd [#allocation3], 4294959104  ;;  %v1558_v0 = vmov 0   ;;  %vm90_vm0 = vcmask 1043456   ;;  %vm59_vm1 = vcmask 162816   ;;  %v30_v2 = vld [vmem:[%s2018_s0 + $0x8] sm:$0xff] }
   0xf   :  { %1464 = vset.pattern.permute.xlu0 %v1558_v0  ;;  %1465 = vset.pattern.permute.xlu1 %v1558_v0  ;;  %v31_v1 = vld [vmem:[%s2018_s0 + $0x10] sm:$0xf]  ;;  %v32_v3 = vld [vmem:[#allocation2] sm:$0xff]  ;;  %v1624_v9 = vld [vmem:[%s2020_s2 + $0x8] sm:$0xff]  ;;  %v1559_v19 = vmov 1   ;;  %v1560_v20 = vmov 2  }
  0x10   :  { %1330 = vmatprep.subr.msk.mxu0 %vm90_vm0, %v31_v1  ;;  %v29_v4 = vld [vmem:[%s2018_s0] sm:$0xff]  ;;  %1336 = vmatprep.mubr.msk.f32.mxu0 %vm59_vm1, %v32_v3  ;;  %v1619_v7 = vld [vmem:[%s2020_s2 + $0x10] sm:$0xff]  ;;  %v1630_v10 = vld [vmem:[%s2020_s2 + $0x18] sm:$0xff]  ;;  %v1561_v21 = vmov 0.0   ;;  %vm1562_vm2 = vmmov 0   ;;  %vm258_vm3 = vcmask 64512  }
  0x11   :  { %1331 = vmatpush3.msk.msra.mxu0 %vm90_vm0, %v31_v1  ;;  %v1613_v5 = vld [vmem:[%s2020_s2] sm:$0xff]  ;;  %228 = vperm.xlu1 %1465, %v1619_v7   ;;  %v1644_v14 = vld [vmem:[%s2020_s2 + $0x28] sm:$0xff]  ;;  %v215_v17 = vld [vmem:[%s2020_s2 + $0x30] sm:$0x3]  ;;  %vm270_vm4 = vcmask 58368   ;;  %v1563_v59 = vmov 3  }
  0x12   :  { %1332 = vmatprep.subr.mxu0 %v30_v2  ;;  %v33_v6 = vld [vmem:[#allocation2 + $0x20] sm:$0xff]  ;;  %218 = vperm.xlu0 %1464, %v1613_v5   ;;  %v1688_v63 = vld [vmem:[%s2020_s2 + $0x30] sm:$0xff]  ;;  %vm518_vm5 = vcmask 1041408   ;;  %vm478_vm6 = vcmask 408576   ;;  %vm675_vm7 = vcmask 60416   ;;  %vm907_vm8 = vcmask 818176  }
  0x13   :  { %1333 = vmatpush3.msra.mxu0 %v30_v2  ;;  %v34_v8 = vld [vmem:[#allocation2 + $0x40] sm:$0xff]  ;;  %1351 = vmatprep.subr.mxu1 %v1561_v21  ;;  %vm1016_vm9 = vcmask 31744   ;;  %vm1231_vm10 = vcmask 57344  }
  0x14   :  { %1334 = vmatprep.subr.mxu0 %v29_v4  ;;  %v35_v11 = vld [vmem:[#allocation2 + $0x60] sm:$0xff]  ;;  %1365 = vmatprep.mubr.msk.f32.mxu1 %vm1562_vm2, %v1561_v21 }
  0x15   :  { %1335 = vmatpush3.msra.mxu0 %v29_v4  ;;  %v36_v12 = vld [vmem:[#allocation2 + $0x80] sm:$0xff]  ;;  %233 = vperm.xlu1 %1465, %v1630_v10  }
  0x16   :  { %1337 = vmatmul.mubr.msk.f32.vlgmr.msra.gmra.mxu0 %vm59_vm1, %v33_v6  ;;  %223 = vperm.xlu0 %1464, %v1624_v9   ;;  %v1638_v13 = vld [vmem:[%s2020_s2 + $0x20] sm:$0xff] }
  0x17   :  { %1339 = vmatprep.mubr.msk.f32.mxu0 %vm59_vm1, %v34_v8  ;;  %v37_v15 = vld [vmem:[#allocation2 + $0xa0] sm:$0xff]  ;;  %1404 = vmatprep.subr.mxu0 %v1561_v21 }
  0x18   :  { %v38_v16 = vld [vmem:[#allocation2 + $0xc0] sm:$0xff] }
  0x19   :  { %243 = vperm.xlu1 %1465, %v1644_v14   ;;  %v39_v18 = vld [vmem:[#allocation2 + $0xe0] sm:$0xff] }
  0x1a   :  { %1340 = vmatmul.mubr.msk.f32.gmra.mxu0 %vm59_vm1, %v35_v11  ;;  %238 = vperm.xlu0 %1464, %v1638_v13   ;;  %v1703_v8 = vld [vmem:[%s2020_s2 + $0x40] sm:$0xff] }
  0x1b   :  { %1342 = vmatprep.mubr.msk.f32.mxu0 %vm59_vm1, %v36_v12 }
  0x1d   :  { %1466 = vset.pattern.permute.xlu1 %v1559_v19 }
  0x1e   :  { %1343 = vmatmul.mubr.msk.f32.gmra.mxu0 %vm59_vm1, %v37_v15  ;;  %248 = vperm.xlu0 %1464, %v215_v17  }
  0x1f   :  { %1345 = vmatprep.mubr.msk.f32.mxu0 %vm59_vm1, %v38_v16  ;;  %348 = vperm.xlu1 %1466, %v215_v17  }
  0x22   :  { %1346 = vmatmul.mubr.msk.f32.gmra.mxu0 %vm59_vm1, %v39_v18  ;;  %1469 = vset.pattern.permute.xlu0 %v1560_v20 }
  0x23   :  { %379 = vperm.xlu0 %1469, %v1644_v14   ;;  %1467 = vset.pattern.permute.xlu1 %v1560_v20 }
  0x24   :  { %383 = vperm.xlu1 %1467, %v215_v17   ;;  %v1717_v17 = vld [vmem:[%s2020_s2 + $0x38] sm:$0xff] }
  0x27   :  { %1470 = vset.pattern.permute.xlu0 %v1559_v19 }
  0x28   :  { %344 = vperm.xlu0 %1470, %v1644_v14   ;;  %1468 = vset.pattern.permute.xlu1 %v1559_v19 }
  0x29   :  { %340 = vperm.xlu1 %1468, %v1638_v13  }
  0x2c   :  { %332 = vperm.xlu0 %1470, %v1619_v7  }
  0x2d   :  { %336 = vperm.xlu1 %1468, %v1630_v10  }
  0x30   :  { %1473 = vset.pattern.permute.xlu0 %v1560_v20 }
  0x31   :  { %367 = vperm.xlu0 %1473, %v1619_v7   ;;  %1471 = vset.pattern.permute.xlu1 %v1560_v20 }
  0x32   :  { %375 = vperm.xlu1 %1471, %v1638_v13  }
  0x35   :  { %359 = vperm.xlu0 %1473, %v1613_v5  }
  0x36   :  { %371 = vperm.xlu1 %1471, %v1630_v10  }
  0x39   :  { %1476 = vset.pattern.permute.xlu0 %v1563_v59 }
  0x3a   :  { %1472 = vset.pattern.permute.xlu1 %v1559_v19  ;;  %420 = vperm.xlu0 %1476, %v1624_v9  }
  0x3b   :  { %328 = vperm.xlu1 %1472, %v1624_v9  }
  0x3e   :  { %435 = vperm.xlu0 %1476, %v1638_v13  }
  0x3f   :  { %324 = vperm.xlu1 %1472, %v1613_v5  }
  0x42   :  { %445 = vperm.xlu0 %1476, %v1688_v63  }
  0x43   :  { %1474 = vset.pattern.permute.xlu1 %v1560_v20 }
  0x44   :  { %363 = vperm.xlu1 %1474, %v1624_v9  }
  0x46   :  { %455 = vperm.xlu0 %1476, %v1703_v8  }
  0x48   :  { %1475 = vset.pattern.permute.xlu1 %v1563_v59 }
  0x49   :  { %415 = vperm.xlu1 %1475, %v1613_v5  }
  0x4d   :  { %425 = vperm.xlu1 %1475, %v1619_v7  }
  0x51   :  { %430 = vperm.xlu1 %1475, %v1630_v10  }
  0x55   :  { %440 = vperm.xlu1 %1475, %v1644_v14  }
  0x59   :  { %450 = vperm.xlu1 %1475, %v1717_v17  }
  0x8c   :  { %v229_v23 = vpop.permute.xlu1 %228 }
  0x8d   :  { %v219_v22 = vpop.permute.xlu0 %218 }
  0x90   :  { %v234_v29 = vpop.permute.xlu1 %233 }
  0x91   :  { %v224_v25 = vpop.permute.xlu0 %223 }
  0x94   :  { %v244_v40 = vpop.permute.xlu1 %243 }
  0x95   :  { %v239_v36 = vpop.permute.xlu0 %238 }
  0x99   :  { %v249_v49 = vpop.permute.xlu0 %248 }
  0xd6   :  { %v1338_v24 = vpop.f32.mrf.mxu0 }
  0xd7   :  { %v252_v27 = vadd.f32 %v1338_v24, %v224_v25 }
  0xd8   :  { %v160_v26 = vpop.f32.mrf.mxu0 }
  0xd9   :  { %v251_v28 = vadd.f32 %v219_v22, %v160_v26  ;;  %v260_v33 = vsel %vm258_vm3, %v252_v27, 0.0 }
  0xda   :  { %v1341_v30 = vpop.f32.mrf.mxu0 }
  0xdb   :  { %v259_v31 = vsel %vm258_vm3, %v251_v28, 0.0  ;;  %v254_v34 = vadd.f32 %v1341_v30, %v234_v29  ;;  %v409_v29 = vld [vmem:[%s2020_s2 + $0x48] sm:$0xff] }
  0xdc   :  { %v170_v32 = vpop.f32.mrf.mxu0  ;;  %v261_v37 = vadd.f32 %v260_v33, %v259_v31  ;;  %v412_v33 = vld [vmem:[%s2020_s2 + $0x60] sm:$0xf]  ;;  %460 = vperm.xlu1 %1475, %v409_v29  }
  0xdd   :  { %v253_v35 = vadd.f32 %v229_v23, %v170_v32  ;;  %v264_v43 = vsel %vm258_vm3, %v254_v34, 0.0  ;;  %v410_v23 = vld [vmem:[%s2020_s2 + $0x50] sm:$0xff]  ;;  %v349_v32 = vpop.permute.xlu1 %348 }
  0xde   :  { %v1344_v38 = vpop.f32.mrf.mxu0  ;;  %465 = vperm.xlu0 %1476, %v410_v23  }
  0xdf   :  { %v262_v39 = vsel %vm258_vm3, %v253_v35, 0.0  ;;  %v256_v44 = vadd.f32 %v1344_v38, %v244_v40  ;;  %v411_v38 = vld [vmem:[%s2020_s2 + $0x58] sm:$0xff] }
  0xe0   :  { %v263_v41 = vadd.f32 %v262_v39, %v261_v37  ;;  %v180_v42 = vpop.f32.mrf.mxu0  ;;  %470 = vperm.xlu1 %1475, %v411_v38  }
  0xe1   :  { %v255_v45 = vadd.f32 %v239_v36, %v180_v42  ;;  %v268_v52 = vsel %vm258_vm3, %v256_v44, 0.0  ;;  %v384_v42 = vpop.permute.xlu1 %383 }
  0xe2   :  { %v265_v46 = vadd.f32 %v264_v43, %v263_v41  ;;  %v1676_v47 = vpop.f32.mrf.mxu0  ;;  %475 = vperm.xlu0 %1476, %v412_v33  }
  0xe3   :  { %v266_v48 = vsel %vm258_vm3, %v255_v45, 0.0 }
  0xe4   :  { %v267_v50 = vadd.f32 %v266_v48, %v265_v46  ;;  %v190_v51 = vpop.f32.mrf.mxu0  ;;  %v1565_v46 = vmov 4  }
  0xe5   :  { %v257_v53 = vadd.f32 %v249_v49, %v190_v51  ;;  %1477 = vset.pattern.permute.xlu1 %v1565_v46  ;;  %v341_v49 = vpop.permute.xlu1 %340 }
  0xe6   :  { %v269_v54 = vadd.f32 %v268_v52, %v267_v50  ;;  %807 = vperm.xlu1 %1477, %v412_v33  }
  0xe7   :  { %v271_v55 = vsel %vm270_vm4, %v257_v53, 0.0 }
  0xe8   :  { %v272_v56 = vadd.f32 %v271_v55, %v269_v54 }
  0xea   :  { %v273_v57 = vrot.slane %v272_v56, 4 }
  0xec   :  { %v274_v58 = vadd.f32 %v273_v57, %v272_v56 }
  0xee   :  { %v275_v60 = vrot.slane %v274_v58, 2 }
  0xf0   :  { %v276_v61 = vadd.f32 %v275_v60, %v274_v58  ;;  %v380_v58 = vpop.permute.xlu0 %379 }
  0xf2   :  { %v277_v62 = vrot.slane %v276_v61, 1 }
  0xf4   :  { %v278_v0 = vadd.f32 %v277_v62, %v276_v61  ;;  %v345_v60 = vpop.permute.xlu0 %344 }
  0xf6   :  { %v279_v1 = vmul.f32 0.02, %v278_v0 }
  0xf8   :  { %v1692_v2 = vsub.f32 %v251_v28, %v279_v1  ;;  %v1694_v3 = vsub.f32 %v252_v27, %v279_v1  ;;  %v1696_v4 = vsub.f32 %v253_v35, %v279_v1  ;;  %v1698_v6 = vsub.f32 %v254_v34, %v279_v1  ;;  %v333_v0 = vpop.permute.xlu0 %332 }
  0xf9   :  { %v1705_v11 = vsub.f32 %v255_v45, %v279_v1  ;;  %v1720_v18 = vsub.f32 %v256_v44, %v279_v1  ;;  %v1729_v25 = vsub.f32 %v257_v53, %v279_v1  ;;  %v1564_v44 = vmov 5   ;;  %v337_v53 = vpop.permute.xlu1 %336 }
  0xfa   :  { %v287_v12 = vmul.f32 %v1692_v2, %v1692_v2  ;;  %v288_v15 = vmul.f32 %v1694_v3, %v1694_v3  ;;  %v289_v16 = vmul.f32 %v1696_v4, %v1696_v4  ;;  %v290_v19 = vmul.f32 %v1698_v6, %v1698_v6  ;;  %1480 = vset.pattern.permute.xlu0 %v1564_v44 }
  0xfb   :  { %v291_v26 = vmul.f32 %v1705_v11, %v1705_v11  ;;  %v292_v30 = vmul.f32 %v1720_v18, %v1720_v18  ;;  %v293_v35 = vmul.f32 %v1729_v25, %v1729_v25  ;;  %868 = vperm.xlu0 %1480, %v411_v38   ;;  %1478 = vset.pattern.permute.xlu1 %v1564_v44 }
  0xfc   :  { %v294_v20 = vsel %vm258_vm3, %v287_v12, 0.0  ;;  %v295_v22 = vsel %vm258_vm3, %v288_v15, 0.0  ;;  %v297_v27 = vsel %vm258_vm3, %v289_v16, 0.0  ;;  %v299_v31 = vsel %vm258_vm3, %v290_v19, 0.0  ;;  %872 = vperm.xlu1 %1478, %v412_v33  }
  0xfd   :  { %v296_v24 = vadd.f32 %v295_v22, %v294_v20  ;;  %v301_v36 = vsel %vm258_vm3, %v291_v26, 0.0  ;;  %v303_v39 = vsel %vm258_vm3, %v292_v30, 0.0  ;;  %v305_v41 = vsel %vm270_vm4, %v293_v35, 0.0  ;;  %v376_v57 = vpop.permute.xlu1 %375 }
  0xff   :  { %v298_v28 = vadd.f32 %v297_v27, %v296_v24  ;;  %856 = vperm.xlu0 %1480, %v1703_v8  }
 0x100   :  { %1479 = vset.pattern.permute.xlu1 %v1565_v46 }
 0x101   :  { %v300_v34 = vadd.f32 %v299_v31, %v298_v28  ;;  %799 = vperm.xlu1 %1479, %v410_v23   ;;  %v372_v59 = vpop.permute.xlu1 %371 }
 0x103   :  { %v302_v37 = vadd.f32 %v301_v36, %v300_v34  ;;  %844 = vperm.xlu0 %1480, %v1644_v14  }
 0x105   :  { %v304_v40 = vadd.f32 %v303_v39, %v302_v37  ;;  %795 = vperm.xlu1 %1479, %v409_v29   ;;  %v329_v61 = vpop.permute.xlu1 %328  ;;  %v44_v39 = vld [vmem:[#allocation2 + $0x48] sm:$0xff] }
 0x107   :  { %v306_v43 = vadd.f32 %v305_v41, %v304_v40  ;;  %1485 = vset.pattern.permute.xlu0 %v1565_v46  ;;  %v45_v40 = vld [vmem:[#allocation2 + $0x68] sm:$0xff] }
 0x108   :  { %803 = vperm.xlu0 %1485, %v411_v38   ;;  %v42_v38 = vld [vmem:[#allocation2 + $0x8] sm:$0xff] }
 0x109   :  { %v307_v45 = vrot.slane %v306_v43, 4  ;;  %1481 = vset.pattern.permute.xlu1 %v1564_v44  ;;  %v325_v22 = vpop.permute.xlu1 %324  ;;  %v46_v41 = vld [vmem:[#allocation2 + $0x88] sm:$0xff] }
 0x10a   :  { %864 = vperm.xlu1 %1481, %v410_v23  }
 0x10b   :  { %v308_v48 = vadd.f32 %v307_v45, %v306_v43  ;;  %v51_v43 = vld [vmem:[#allocation2 + $0x128] sm:$0xff] }
 0x10c   :  { %791 = vperm.xlu0 %1485, %v1703_v8   ;;  %v54_v45 = vld [vmem:[#allocation2 + $0x188] sm:$0xf] }
 0x10d   :  { %v309_v50 = vrot.slane %v308_v48, 2  ;;  %v364_v30 = vpop.permute.xlu1 %363 }
 0x10e   :  { %860 = vperm.xlu1 %1481, %v409_v29  }
 0x10f   :  { %v310_v51 = vadd.f32 %v309_v50, %v308_v48 }
 0x110   :  { %779 = vperm.xlu0 %1485, %v1644_v14  }
 0x111   :  { %v311_v52 = vrot.slane %v310_v51, 1 }
 0x112   :  { %1482 = vset.pattern.permute.xlu1 %v1565_v46 }
 0x113   :  { %v312_v54 = vadd.f32 %v311_v52, %v310_v51  ;;  %787 = vperm.xlu1 %1482, %v1717_v17   ;;  %v416_v51 = vpop.permute.xlu1 %415 }
 0x114   :  { %767 = vperm.xlu0 %1485, %v1619_v7  }
 0x115   :  { %v313_v55 = vmul.f32 0.02, %v312_v54 }
 0x117   :  { %v314_v56 = vadd.f32 1e-05, %v313_v55  ;;  %783 = vperm.xlu1 %1482, %v1688_v63   ;;  %v426_v55 = vpop.permute.xlu1 %425 }
 0x118   :  { %1488 = vset.pattern.permute.xlu0 %v1564_v44 }
 0x119   :  { %1503 = vrsqrt.f32 %v314_v56  ;;  %832 = vperm.xlu0 %1488, %v1619_v7  }
 0x11b   :  { %1483 = vset.pattern.permute.xlu1 %v1564_v44 }
 0x11c   :  { %852 = vperm.xlu1 %1483, %v1717_v17  }
 0x11d   :  { %824 = vperm.xlu0 %1488, %v1613_v5  }
 0x120   :  { %848 = vperm.xlu1 %1483, %v1688_v63   ;;  %v43_v63 = vld [vmem:[#allocation2 + $0x28] sm:$0xff] }
 0x124   :  { %1484 = vset.pattern.permute.xlu1 %v1565_v46 }
 0x125   :  { %775 = vperm.xlu1 %1484, %v1638_v13  }
 0x126   :  { %v1504_v62 = vpop.eup %1503 }
 0x127   :  { %v322_v1 = vmul.f32 %v1504_v62, %v1729_v25  ;;  %v320_v8 = vmul.f32 %v1504_v62, %v1705_v11  ;;  %v319_v14 = vmul.f32 %v1504_v62, %v1698_v6  ;;  %v321_v12 = vmul.f32 %v1504_v62, %v1720_v18  ;;  %v368_v6 = vpop.permute.xlu0 %367 }
 0x128   :  { %v318_v20 = vmul.f32 %v1504_v62, %v1696_v4  ;;  %v317_v25 = vmul.f32 %v1504_v62, %v1694_v3  ;;  %v316_v27 = vmul.f32 %v1504_v62, %v1692_v2 }
 0x129   :  { %v357_v15 = vmul.f32 %v349_v32, %v322_v1  ;;  %v355_v16 = vmul.f32 %v341_v49, %v320_v8  ;;  %v356_v19 = vmul.f32 %v345_v60, %v321_v12  ;;  %v354_v7 = vmul.f32 %v337_v53, %v319_v14  ;;  %771 = vperm.xlu1 %1484, %v1630_v10   ;;  %v431_v60 = vpop.permute.xlu1 %430 }
 0x12a   :  { %v353_v26 = vmul.f32 %v333_v0, %v318_v20  ;;  %v352_v4 = vmul.f32 %v329_v61, %v317_v25  ;;  %v351_v31 = vmul.f32 %v325_v22, %v316_v27 }
 0x12b   :  { %v392_v23 = vadd.f32 %v384_v42, %v357_v15  ;;  %v391_v24 = vadd.f32 %v380_v58, %v356_v19  ;;  %v390_v18 = vadd.f32 %v376_v57, %v355_v16  ;;  %v389_v28 = vadd.f32 %v372_v59, %v354_v7  ;;  %v360_v33 = vpop.permute.xlu0 %359  ;;  %v49_v42 = vld [vmem:[#allocation2 + $0xe8] sm:$0xff]  ;;  %v40_v19 = vld [vmem:[#allocation2 + $0x100] sm:$0xff] }
 0x12c   :  { %v388_v32 = vadd.f32 %v368_v6, %v353_v26  ;;  %v387_v2 = vadd.f32 %v364_v30, %v352_v4  ;;  %v386_v36 = vadd.f32 %v360_v33, %v351_v31  ;;  %1348 = vmatprep.mubr.msk.f32.mxu0 %vm59_vm1, %v40_v19 }
 0x12d   :  { %v399_v11 = vmax.f32 %v392_v23, 0.0  ;;  %v398_v29 = vmax.f32 %v391_v24, 0.0  ;;  %v397_v3 = vmax.f32 %v390_v18, 0.0  ;;  %v396_v34 = vmax.f32 %v389_v28, 0.0  ;;  %1486 = vset.pattern.permute.xlu1 %v1564_v44  ;;  %v441_v15 = vpop.permute.xlu1 %440  ;;  %v41_v23 = vld [vmem:[#allocation2 + $0x120] sm:$0xff] }
 0x12e   :  { %v395_v35 = vmax.f32 %v388_v32, 0.0  ;;  %v394_v17 = vmax.f32 %v387_v2, 0.0  ;;  %v393_v37 = vmax.f32 %v386_v36, 0.0  ;;  %840 = vperm.xlu1 %1486, %v1638_v13   ;;  %v47_v13 = vld [vmem:[#allocation2 + $0xa8] sm:$0xff]  ;;  %1349 = vmatmul.mubr.msk.f32.gmra.mxu0 %vm59_vm1, %v41_v23  ;;  %v901_v2 = vld [vmem:[%s2020_s2] sm:$0xf] }
 0x12f   :  { %1352 = vmatpush3.msk.msra.mxu1 %vm518_vm5, %v399_v11  ;;  %v421_v58 = vpop.permute.xlu0 %420  ;;  %1430 = vmatprep.mubr.msk.f32.mxu0 %vm1562_vm2, %v1561_v21 }
 0x130   :  { %1353 = vmatprep.subr.mxu1 %v1561_v21 }
 0x131   :  { %1354 = vmatpush3.msra.mxu1 %v398_v29  ;;  %v451_v4 = vpop.permute.xlu1 %450 }
 0x132   :  { %1355 = vmatprep.subr.mxu1 %v1561_v21  ;;  %836 = vperm.xlu1 %1486, %v1630_v10   ;;  %v48_v10 = vld [vmem:[#allocation2 + $0xc8] sm:$0xff] }
 0x133   :  { %1356 = vmatpush3.msra.mxu1 %v397_v3  ;;  %v436_v62 = vpop.permute.xlu0 %435 }
 0x134   :  { %1357 = vmatprep.subr.mxu1 %v1561_v21 }
 0x135   :  { %1358 = vmatpush3.msra.mxu1 %v396_v34 }
 0x136   :  { %1359 = vmatprep.subr.mxu1 %v1561_v21  ;;  %1487 = vset.pattern.permute.xlu1 %v1565_v46 }
 0x137   :  { %1360 = vmatpush3.msra.mxu1 %v395_v35  ;;  %763 = vperm.xlu1 %1487, %v1624_v9   ;;  %v446_v7 = vpop.permute.xlu0 %445 }
 0x138   :  { %1361 = vmatprep.subr.mxu1 %v1561_v21 }
 0x139   :  { %1362 = vmatpush3.msra.mxu1 %v394_v17  ;;  %v1566_v17 = vmov 6  }
 0x13a   :  { %1363 = vmatprep.subr.mxu1 %v1561_v21 }
 0x13b   :  { %1364 = vmatpush3.msra.mxu1 %v393_v37  ;;  %759 = vperm.xlu1 %1487, %v1613_v5   ;;  %v50_v5 = vld [vmem:[#allocation2 + $0x108] sm:$0xff]  ;;  %v456_v33 = vpop.permute.xlu0 %455  ;;  %v1567_v37 = vmov 7  }
 0x13c   :  { %1366 = vmatmul.mubr.msk.f32.vlgmr.msra.gmra.mxu1 %vm478_vm6, %v42_v38  ;;  %1491 = vset.pattern.permute.xlu0 %v1567_v37 }
 0x13d   :  { %1368 = vmatprep.mubr.msk.f32.mxu1 %vm1562_vm2, %v1561_v21  ;;  %1006 = vperm.xlu0 %1491, %v901_v2  }
 0x13f   :  { %1489 = vset.pattern.permute.xlu1 %v1564_v44  ;;  %v53_v44 = vld [vmem:[#allocation2 + $0x168] sm:$0xff] }
 0x140   :  { %1369 = vmatmul.mubr.msk.f32.gmra.mxu1 %vm478_vm6, %v43_v63  ;;  %828 = vperm.xlu1 %1489, %v1624_v9   ;;  %v52_v9 = vld [vmem:[#allocation2 + $0x148] sm:$0xff] }
 0x141   :  { %1371 = vmatprep.mubr.msk.f32.mxu1 %vm1562_vm2, %v1561_v21 }
 0x144   :  { %1372 = vmatmul.mubr.msk.f32.gmra.mxu1 %vm478_vm6, %v44_v39  ;;  %1490 = vset.pattern.permute.xlu1 %v1566_v17 }
 0x145   :  { %1374 = vmatprep.mubr.msk.f32.mxu1 %vm1562_vm2, %v1561_v21  ;;  %904 = vperm.xlu1 %1490, %v901_v2  }
 0x148   :  { %1375 = vmatmul.mubr.msk.f32.gmra.mxu1 %vm478_vm6, %v45_v40 }
 0x149   :  { %1377 = vmatprep.mubr.msk.f32.mxu1 %vm1562_vm2, %v1561_v21 }
 0x14c   :  { %1378 = vmatmul.mubr.msk.f32.gmra.mxu1 %vm478_vm6, %v46_v41 }
 0x14d   :  { %1380 = vmatprep.mubr.msk.f32.mxu1 %vm1562_vm2, %v1561_v21 }
 0x150   :  { %1381 = vmatmul.mubr.msk.f32.gmra.mxu1 %vm478_vm6, %v47_v13 }
 0x151   :  { %1383 = vmatprep.mubr.msk.f32.mxu1 %vm1562_vm2, %v1561_v21 }
 0x154   :  { %1384 = vmatmul.mubr.msk.f32.gmra.mxu1 %vm478_vm6, %v48_v10 }
 0x155   :  { %1386 = vmatprep.mubr.msk.f32.mxu1 %vm1562_vm2, %v1561_v21 }
 0x157   :  { %v461_v41 = vpop.permute.xlu1 %460 }
 0x158   :  { %1387 = vmatmul.mubr.msk.f32.gmra.mxu1 %vm478_vm6, %v49_v42 }
 0x159   :  { %1389 = vmatprep.mubr.msk.f32.mxu1 %vm1562_vm2, %v1561_v21 }
 0x15c   :  { %1390 = vmatmul.mubr.msk.f32.gmra.mxu1 %vm478_vm6, %v50_v5 }
 0x15d   :  { %1392 = vmatprep.mubr.msk.f32.mxu1 %vm1562_vm2, %v1561_v21 }
 0x160   :  { %1393 = vmatmul.mubr.msk.f32.gmra.mxu1 %vm478_vm6, %v51_v43  ;;  %v466_v43 = vpop.permute.xlu0 %465 }
 0x161   :  { %1395 = vmatprep.mubr.msk.f32.mxu1 %vm1562_vm2, %v1561_v21 }
 0x164   :  { %1396 = vmatmul.mubr.msk.f32.gmra.mxu1 %vm478_vm6, %v52_v9 }
 0x165   :  { %1398 = vmatprep.mubr.msk.f32.mxu1 %vm1562_vm2, %v1561_v21 }
 0x168   :  { %1399 = vmatmul.mubr.msk.f32.gmra.mxu1 %vm478_vm6, %v53_v44 }
 0x169   :  { %1401 = vmatprep.mubr.msk.f32.mxu1 %vm1562_vm2, %v1561_v21 }
 0x16c   :  { %1402 = vmatmul.mubr.msk.f32.gmra.mxu1 %vm478_vm6, %v54_v45  ;;  %v1568_v45 = vmov 8  }
 0x16d   :  { %1492 = vset.pattern.permute.xlu1 %v1568_v45 }
 0x16e   :  { %1011 = vperm.xlu1 %1492, %v901_v2  }
 0x1fc   :  { %v588_v46 = vpop.f32.mrf.mxu1 }
 0x1fd   :  { %v1835_v14 = vadd.f32 %v588_v46, %v416_v51 }
 0x1fe   :  { %v1367_v48 = vpop.f32.mrf.mxu1 }
 0x1ff   :  { %v652_v25 = vsel %vm258_vm3, %v1835_v14, 0.0 }
 0x200   :  { %v593_v49 = vpop.f32.mrf.mxu1 }
 0x201   :  { %v1833_v1 = vadd.f32 %v593_v49, %v421_v58 }
 0x202   :  { %v1370_v50 = vpop.f32.mrf.mxu1 }
 0x203   :  { %v653_v20 = vsel %vm258_vm3, %v1833_v1, 0.0 }
 0x204   :  { %v598_v52 = vpop.f32.mrf.mxu1  ;;  %v654_v18 = vadd.f32 %v653_v20, %v652_v25 }
 0x205   :  { %v1837_v12 = vadd.f32 %v598_v52, %v426_v55  ;;  %v471_v52 = vpop.permute.xlu1 %470 }
 0x206   :  { %v1373_v53 = vpop.f32.mrf.mxu1 }
 0x207   :  { %v655_v6 = vsel %vm258_vm3, %v1837_v12, 0.0 }
 0x208   :  { %v603_v54 = vpop.f32.mrf.mxu1  ;;  %v656_v29 = vadd.f32 %v655_v6, %v654_v18 }
 0x209   :  { %v1841_v22 = vadd.f32 %v603_v54, %v431_v60  ;;  %v476_v60 = vpop.permute.xlu0 %475  ;;  %v1886_v23 = vpop.permute.xlu1 %807 }
 0x20a   :  { %v1376_v56 = vpop.f32.mrf.mxu1 }
 0x20b   :  { %v657_v27 = vsel %vm258_vm3, %v1841_v22, 0.0 }
 0x20c   :  { %v608_v57 = vpop.f32.mrf.mxu1  ;;  %v658_v32 = vadd.f32 %v657_v27, %v656_v29 }
 0x20d   :  { %v1849_v11 = vadd.f32 %v608_v57, %v436_v62  ;;  %v1888_v6 = vpop.permute.xlu1 %872 }
 0x20e   :  { %v1379_v59 = vpop.f32.mrf.mxu1 }
 0x20f   :  { %v659_v3 = vsel %vm258_vm3, %v1849_v11, 0.0 }
 0x210   :  { %v613_v61 = vpop.f32.mrf.mxu1  ;;  %v660_v38 = vadd.f32 %v659_v3, %v658_v32 }
 0x211   :  { %v1855_v28 = vadd.f32 %v613_v61, %v441_v15  ;;  %v1890_v29 = vpop.permute.xlu1 %799 }
 0x212   :  { %v1382_v0 = vpop.f32.mrf.mxu1 }
 0x213   :  { %v661_v35 = vsel %vm258_vm3, %v1855_v28, 0.0 }
 0x214   :  { %v618_v8 = vpop.f32.mrf.mxu1  ;;  %v662_v13 = vadd.f32 %v661_v35, %v660_v38 }
 0x215   :  { %v1859_v31 = vadd.f32 %v618_v8, %v446_v7 }
 0x216   :  { %v1385_v16 = vpop.f32.mrf.mxu1 }
 0x217   :  { %v663_v39 = vsel %vm258_vm3, %v1859_v31, 0.0 }
 0x218   :  { %v623_v24 = vpop.f32.mrf.mxu1  ;;  %v664_v9 = vadd.f32 %v663_v39, %v662_v13 }
 0x219   :  { %v1866_v36 = vadd.f32 %v623_v24, %v451_v4 }
 0x21a   :  { %v1388_v26 = vpop.f32.mrf.mxu1 }
 0x21b   :  { %v665_v42 = vsel %vm258_vm3, %v1866_v36, 0.0 }
 0x21c   :  { %v628_v30 = vpop.f32.mrf.mxu1  ;;  %v666_v49 = vadd.f32 %v665_v42, %v664_v9 }
 0x21d   :  { %v1870_v40 = vadd.f32 %v628_v30, %v456_v33 }
 0x21e   :  { %v1391_v34 = vpop.f32.mrf.mxu1 }
 0x21f   :  { %v667_v46 = vsel %vm258_vm3, %v1870_v40, 0.0 }
 0x220   :  { %v633_v63 = vpop.f32.mrf.mxu1  ;;  %v668_v53 = vadd.f32 %v667_v46, %v666_v49 }
 0x221   :  { %v1874_v5 = vadd.f32 %v633_v63, %v461_v41 }
 0x222   :  { %v1394_v10 = vpop.f32.mrf.mxu1 }
 0x223   :  { %v669_v51 = vsel %vm258_vm3, %v1874_v5, 0.0 }
 0x224   :  { %v638_v44 = vpop.f32.mrf.mxu1  ;;  %v670_v57 = vadd.f32 %v669_v51, %v668_v53 }
 0x225   :  { %v1878_v48 = vadd.f32 %v638_v44, %v466_v43 }
 0x226   :  { %v1397_v50 = vpop.f32.mrf.mxu1 }
 0x227   :  { %v671_v55 = vsel %vm258_vm3, %v1878_v48, 0.0 }
 0x228   :  { %v643_v54 = vpop.f32.mrf.mxu1  ;;  %v672_v61 = vadd.f32 %v671_v55, %v670_v57 }
 0x229   :  { %v644_v56 = vadd.f32 %v643_v54, %v471_v52 }
 0x22a   :  { %v1400_v58 = vpop.f32.mrf.mxu1 }
 0x22b   :  { %v673_v59 = vsel %vm258_vm3, %v644_v56, 0.0 }
 0x22c   :  { %v648_v62 = vpop.f32.mrf.mxu1  ;;  %v674_v8 = vadd.f32 %v673_v59, %v672_v61 }
 0x22d   :  { %v649_v0 = vadd.f32 %v648_v62, %v476_v60 }
 0x22e   :  { %v1403_v15 = vpop.f32.mrf.mxu1 }
 0x22f   :  { %v676_v16 = vsel %vm675_vm7, %v649_v0, 0.0 }
 0x230   :  { %v677_v19 = vadd.f32 %v676_v16, %v674_v8 }
 0x232   :  { %v678_v20 = vrot.slane %v677_v19, 4 }
 0x234   :  { %v679_v7 = vadd.f32 %v678_v20, %v677_v19 }
 0x236   :  { %v680_v24 = vrot.slane %v679_v7, 2 }
 0x238   :  { %v681_v25 = vadd.f32 %v680_v24, %v679_v7 }
 0x23a   :  { %v682_v18 = vrot.slane %v681_v25, 1 }
 0x23c   :  { %v683_v26 = vadd.f32 %v682_v18, %v681_v25 }
 0x23e   :  { %v684_v27 = vmul.f32 0.01, %v683_v26 }
 0x240   :  { %v1893_v4 = vsub.f32 %v1835_v14, %v684_v27  ;;  %v1896_v30 = vsub.f32 %v1833_v1, %v684_v27  ;;  %v1899_v3 = vsub.f32 %v1837_v12, %v684_v27  ;;  %v1902_v32 = vsub.f32 %v1841_v22, %v684_v27  ;;  %v1913_v1 = vpop.permute.xlu1 %795 }
 0x241   :  { %v1909_v2 = vsub.f32 %v1849_v11, %v684_v27  ;;  %v1916_v12 = vsub.f32 %v1855_v28, %v684_v27  ;;  %v1923_v38 = vsub.f32 %v1859_v31, %v684_v27  ;;  %v1929_v28 = vsub.f32 %v1866_v36, %v684_v27 }
 0x242   :  { %v698_v33 = vmul.f32 %v1893_v4, %v1893_v4  ;;  %v699_v34 = vmul.f32 %v1896_v30, %v1896_v30  ;;  %v700_v14 = vmul.f32 %v1899_v3, %v1899_v3  ;;  %v701_v22 = vmul.f32 %v1902_v32, %v1902_v32 }
 0x243   :  { %v702_v11 = vmul.f32 %v1909_v2, %v1909_v2  ;;  %v703_v41 = vmul.f32 %v1916_v12, %v1916_v12  ;;  %v1937_v31 = vsub.f32 %v1870_v40, %v684_v27  ;;  %v704_v43 = vmul.f32 %v1923_v38, %v1923_v38 }
 0x244   :  { %v711_v35 = vsel %vm258_vm3, %v698_v33, 0.0  ;;  %v712_v17 = vsel %vm258_vm3, %v699_v34, 0.0  ;;  %v714_v63 = vsel %vm258_vm3, %v700_v14, 0.0  ;;  %v716_v13 = vsel %vm258_vm3, %v701_v22, 0.0  ;;  %v1934_v10 = vpop.permute.xlu1 %864  ;;  %v869_v34 = vpop.permute.xlu0 %868 }
 0x245   :  { %v713_v37 = vadd.f32 %v712_v17, %v711_v35  ;;  %v718_v9 = vsel %vm258_vm3, %v702_v11, 0.0  ;;  %v694_v36 = vsub.f32 %v1874_v5, %v684_v27  ;;  %v705_v45 = vmul.f32 %v1929_v28, %v1929_v28 }
 0x246   :  { %v720_v46 = vsel %vm258_vm3, %v703_v41, 0.0  ;;  %v695_v50 = vsub.f32 %v1878_v48, %v684_v27  ;;  %v706_v40 = vmul.f32 %v1937_v31, %v1937_v31  ;;  %v722_v51 = vsel %vm258_vm3, %v704_v43, 0.0 }
 0x247   :  { %v715_v39 = vadd.f32 %v714_v63, %v713_v37  ;;  %v696_v54 = vsub.f32 %v644_v56, %v684_v27  ;;  %v707_v55 = vmul.f32 %v694_v36, %v694_v36  ;;  %v724_v57 = vsel %vm258_vm3, %v705_v45, 0.0 }
 0x248   :  { %v861_v52 = vpop.permute.xlu1 %860  ;;  %v697_v58 = vsub.f32 %v649_v0, %v684_v27  ;;  %v708_v59 = vmul.f32 %v695_v50, %v695_v50  ;;  %v726_v60 = vsel %vm258_vm3, %v706_v40, 0.0  ;;  %v857_v37 = vpop.permute.xlu0 %856 }
 0x249   :  { %v717_v42 = vadd.f32 %v716_v13, %v715_v39  ;;  %v709_v62 = vmul.f32 %v696_v54, %v696_v54  ;;  %v728_v48 = vsel %vm258_vm3, %v707_v55, 0.0 }
 0x24a   :  { %v710_v16 = vmul.f32 %v697_v58, %v697_v58  ;;  %v730_v19 = vsel %vm258_vm3, %v708_v59, 0.0 }
 0x24b   :  { %v719_v44 = vadd.f32 %v718_v9, %v717_v42  ;;  %v732_v56 = vsel %vm258_vm3, %v709_v62, 0.0 }
 0x24c   :  { %v788_v8 = vpop.permute.xlu1 %787  ;;  %v734_v24 = vsel %vm675_vm7, %v710_v16, 0.0  ;;  %v845_v41 = vpop.permute.xlu0 %844 }
 0x24d   :  { %v721_v49 = vadd.f32 %v720_v46, %v719_v44 }
 0x24f   :  { %v723_v53 = vadd.f32 %v722_v51, %v721_v49 }
 0x250   :  { %v784_v25 = vpop.permute.xlu1 %783  ;;  %v804_v42 = vpop.permute.xlu0 %803 }
 0x251   :  { %v725_v5 = vadd.f32 %v724_v57, %v723_v53 }
 0x253   :  { %v727_v61 = vadd.f32 %v726_v60, %v725_v5 }
 0x254   :  { %v853_v27 = vpop.permute.xlu1 %852  ;;  %v792_v44 = vpop.permute.xlu0 %791 }
 0x255   :  { %v729_v15 = vadd.f32 %v728_v48, %v727_v61 }
 0x257   :  { %v731_v20 = vadd.f32 %v730_v19, %v729_v15 }
 0x258   :  { %v849_v35 = vpop.permute.xlu1 %848  ;;  %v780_v48 = vpop.permute.xlu0 %779 }
 0x259   :  { %v733_v7 = vadd.f32 %v732_v56, %v731_v20 }
 0x25b   :  { %v735_v0 = vadd.f32 %v734_v24, %v733_v7 }
 0x25c   :  { %v776_v39 = vpop.permute.xlu1 %775 }
 0x25d   :  { %v736_v18 = vrot.slane %v735_v0, 4 }
 0x25f   :  { %v737_v26 = vadd.f32 %v736_v18, %v735_v0 }
 0x260   :  { %v772_v13 = vpop.permute.xlu1 %771 }
 0x261   :  { %v738_v33 = vrot.slane %v737_v26, 2 }
 0x263   :  { %v739_v14 = vadd.f32 %v738_v33, %v737_v26 }
 0x264   :  { %v841_v43 = vpop.permute.xlu1 %840 }
 0x265   :  { %v740_v22 = vrot.slane %v739_v14, 1 }
 0x267   :  { %v741_v17 = vadd.f32 %v740_v22, %v739_v14 }
 0x268   :  { %v837_v57 = vpop.permute.xlu1 %836 }
 0x269   :  { %v742_v11 = vmul.f32 0.01, %v741_v17 }
 0x26b   :  { %v743_v63 = vadd.f32 1e-05, %v742_v11 }
 0x26d   :  { %1505 = vrsqrt.f32 %v743_v63 }
 0x27a   :  { %v1506_v9 = vpop.eup %1505 }
 0x27b   :  { %v757_v45 = vmul.f32 %v1506_v9, %v697_v58  ;;  %v755_v46 = vmul.f32 %v1506_v9, %v695_v50  ;;  %v754_v49 = vmul.f32 %v1506_v9, %v694_v36  ;;  %v756_v40 = vmul.f32 %v1506_v9, %v696_v54 }
 0x27c   :  { %v752_v60 = vmul.f32 %v1506_v9, %v1929_v28  ;;  %v753_v62 = vmul.f32 %v1506_v9, %v1937_v31  ;;  %v751_v50 = vmul.f32 %v1506_v9, %v1923_v38  ;;  %v750_v16 = vmul.f32 %v1506_v9, %v1916_v12 }
 0x27d   :  { %v822_v51 = vmul.f32 %v1886_v23, %v757_v45  ;;  %v820_v53 = vmul.f32 %v1890_v29, %v755_v46  ;;  %v821_v55 = vmul.f32 %v804_v42, %v756_v40  ;;  %v819_v59 = vmul.f32 %v1913_v1, %v754_v49  ;;  %v1110_v45 = vld [vmem:[%s2020_s2 + $0x8] sm:$0xff]  ;;  %v1111_v49 = vld [vmem:[%s2020_s2 + $0x10] sm:$0xff] }
 0x27e   :  { %v818_v23 = vmul.f32 %v792_v44, %v753_v62  ;;  %v817_v29 = vmul.f32 %v788_v8, %v752_v60  ;;  %v816_v28 = vmul.f32 %v784_v25, %v751_v50  ;;  %v749_v31 = vmul.f32 %v1506_v9, %v1909_v2  ;;  %v1109_v44 = vld [vmem:[%s2020_s2] sm:$0xff] }
 0x27f   :  { %v887_v5 = vadd.f32 %v1888_v6, %v822_v51  ;;  %v886_v61 = vadd.f32 %v869_v34, %v821_v55  ;;  %v885_v36 = vadd.f32 %v1934_v10, %v820_v53  ;;  %v884_v54 = vadd.f32 %v861_v52, %v819_v59  ;;  %v764_v6 = vpop.permute.xlu1 %763  ;;  %v768_v10 = vpop.permute.xlu0 %767 }
 0x280   :  { %v883_v19 = vadd.f32 %v857_v37, %v818_v23  ;;  %v882_v52 = vadd.f32 %v853_v27, %v817_v29  ;;  %v748_v8 = vmul.f32 %v1506_v9, %v1902_v32  ;;  %v815_v20 = vmul.f32 %v780_v48, %v750_v16 }
 0x281   :  { %v900_v58 = vmax.f32 %v887_v5, 0.0  ;;  %v899_v15 = vmax.f32 %v886_v61, 0.0  ;;  %v898_v1 = vmax.f32 %v885_v36, 0.0  ;;  %v897_v38 = vmax.f32 %v884_v54, 0.0  ;;  %v1350_v5 = vpop.f32.mrf.mxu0 }
 0x282   :  { %v881_v12 = vadd.f32 %v849_v35, %v816_v28  ;;  %v814_v56 = vmul.f32 %v776_v39, %v749_v31  ;;  %v896_v7 = vmax.f32 %v883_v19, 0.0  ;;  %v747_v24 = vmul.f32 %v1506_v9, %v1899_v3 }
 0x283   :  { %1405 = vmatpush3.msk.msra.mxu0 %vm90_vm0, %v900_v58  ;;  %v760_v2 = vpop.permute.xlu1 %759  ;;  %v895_v25 = vmax.f32 %v882_v52, 0.0  ;;  %v813_v0 = vmul.f32 %v772_v13, %v748_v8  ;;  %v880_v18 = vadd.f32 %v845_v41, %v815_v20  ;;  %v746_v26 = vmul.f32 %v1506_v9, %v1896_v30  ;;  %v833_v32 = vpop.permute.xlu0 %832 }
 0x284   :  { %1406 = vmatprep.subr.mxu0 %v1561_v21  ;;  %v894_v27 = vmax.f32 %v881_v12, 0.0  ;;  %v879_v33 = vadd.f32 %v841_v43, %v814_v56  ;;  %v812_v34 = vmul.f32 %v768_v10, %v747_v24  ;;  %v745_v14 = vmul.f32 %v1506_v9, %v1893_v4  ;;  %v55_v9 = vld [vmem:[#allocation2 + $0x10] sm:$0xf]  ;;  %v200_v59 = vpop.f32.mrf.mxu0 }
 0x285   :  { %1407 = vmatpush3.msra.mxu0 %v899_v15  ;;  %v878_v3 = vadd.f32 %v837_v57, %v813_v0  ;;  %v893_v22 = vmax.f32 %v880_v18, 0.0  ;;  %v811_v35 = vmul.f32 %v764_v6, %v746_v26  ;;  %v1569_v46 = vmov 9   ;;  %v1198_v57 = vld [vmem:[%s2020_s2] sm:$0x1]  ;;  %v56_v26 = vld [vmem:[#allocation2 + $0x18] sm:$0xff]  ;;  %s1574_s2 = smov [#allocation5]  }
 0x286   :  { %1408 = vmatprep.subr.mxu0 %v1561_v21  ;;  %v892_v30 = vmax.f32 %v879_v33, 0.0  ;;  %v810_v37 = vmul.f32 %v760_v2, %v745_v14  ;;  %v877_v11 = vadd.f32 %v833_v32, %v812_v34  ;;  %1493 = vset.pattern.permute.xlu1 %v1569_v46  ;;  %v1570_v40 = vmov 10   ;;  %v57_v32 = vld [vmem:[#allocation2 + $0x38] sm:$0xff]  ;;  %s1239_s5 = sshll.u32 %s1574_s2, 4  ;;  %s1240_s5 = int_to_ptr.vmem [resolvable:$true] %s1239_s5 }
 0x287   :  { %1409 = vmatpush3.msra.mxu0 %v898_v1  ;;  %v829_v17 = vpop.permute.xlu1 %828  ;;  %v825_v63 = vpop.permute.xlu0 %824  ;;  %v891_v39 = vmax.f32 %v878_v3, 0.0  ;;  %1494 = vset.pattern.permute.xlu0 %v1569_v46  ;;  %v1571_v51 = vmov 11   ;;  %v1572_v53 = vmov 13   ;;  %v1573_v55 = vmov 12   ;;  %s1531_s6 = scalar_lea.vmem %s1240_s5, 16  ;;  %s1535_s7 = scalar_lea.vmem %s1240_s5, 32 }
 0x288   :  { %1410 = vmatprep.subr.mxu0 %v1561_v21  ;;  %v876_v41 = vadd.f32 %v829_v17, %v811_v35  ;;  %v890_v4 = vmax.f32 %v877_v11, 0.0  ;;  %v875_v13 = vadd.f32 %v825_v63, %v810_v37  ;;  %1114 = vperm.xlu1 %1493, %v1109_v44   ;;  %p1532_p5 = scmp.ne.s32.totalorder %s1240_s5, %s1531_s6  ;;  %p1536_p6 = scmp.lt.s32.totalorder %s1240_s5, %s1240_s5 }
 0x289   :  { %1411 = vmatpush3.msra.mxu0 %v897_v38  ;;  %1119 = vperm.xlu0 %1494, %v1110_v45   ;;  %p1537_p7 = scmp.lt.s32.totalorder %s1535_s7, %s1531_s6 }
 0x28a   :  { %1412 = vmatprep.subr.mxu0 %v1561_v21  ;;  %v889_v42 = vmax.f32 %v876_v41, 0.0  ;;  %v888_v43 = vmax.f32 %v875_v13, 0.0 }
 0x28b   :  { %1413 = vmatpush3.msra.mxu0 %v896_v7  ;;  %v905_v60 = vpop.permute.xlu1 %904  ;;  %v1007_v7 = vpop.permute.xlu0 %1006  ;;  %p1538_p8 = por %p1537_p7, %p1536_p6 }
 0x28c   :  { %1414 = vmatprep.subr.mxu0 %v1561_v21  ;;  %1124 = vperm.xlu1 %1493, %v1111_v49  }
 0x28d   :  { %1415 = vmatpush3.msra.mxu0 %v895_v25  ;;  %1496 = vset.pattern.permute.xlu0 %v1570_v40  ;;  %p1539_p9 = pnand %p1538_p8, %p1532_p5 }
 0x28e   :  { %1416 = vmatprep.subr.mxu0 %v1561_v21  ;;  %1170 = vperm.xlu0 %1496, %v1110_v45  }
 0x28f   :  { %1417 = vmatpush3.msra.mxu0 %v894_v27  ;;  %v1012_v2 = vpop.permute.xlu1 %1011  ;;  %v58_v27 = vld [vmem:[#allocation2 + $0x58] sm:$0xff] }
 0x290   :  { %1418 = vmatprep.subr.mxu0 %v1561_v21  ;;  %1495 = vset.pattern.permute.xlu1 %v1570_v40 }
 0x291   :  { %1419 = vmatpush3.msra.mxu0 %v893_v22  ;;  %1166 = vperm.xlu1 %1495, %v1109_v44  }
 0x292   :  { %1420 = vmatprep.subr.mxu0 %v1561_v21  ;;  %1498 = vset.pattern.permute.xlu0 %v1571_v51 }
 0x293   :  { %1421 = vmatpush3.msra.mxu0 %v892_v30  ;;  %1185 = vperm.xlu0 %1498, %v1110_v45  }
 0x294   :  { %1422 = vmatprep.subr.mxu0 %v1561_v21 }
 0x295   :  { %1423 = vmatpush3.msra.mxu0 %v891_v39  ;;  %1174 = vperm.xlu1 %1495, %v1111_v49  }
 0x296   :  { %1424 = vmatprep.subr.mxu0 %v1561_v21 }
 0x297   :  { %1425 = vmatpush3.msra.mxu0 %v890_v4  ;;  %1500 = vset.pattern.permute.xlu0 %v1572_v53 }
 0x298   :  { %1426 = vmatprep.subr.mxu0 %v1561_v21  ;;  %1204 = vperm.xlu0 %1500, %v1110_v45  }
 0x299   :  { %1427 = vmatpush3.msra.mxu0 %v889_v42  ;;  %1497 = vset.pattern.permute.xlu1 %v1571_v51 }
 0x29a   :  { %1428 = vmatprep.subr.mxu0 %v1561_v21  ;;  %1181 = vperm.xlu1 %1497, %v1109_v44  }
 0x29b   :  { %1429 = vmatpush3.msra.mxu0 %v888_v43 }
 0x29c   :  { %1431 = vmatmul.mubr.msk.f32.vlgmr.msra.gmra.mxu0 %vm907_vm8, %v55_v9  ;;  %1433 = vmatprep.subr.mxu0 %v1561_v21 }
 0x29d   :  { %1435 = vmatprep.mubr.msk.f32.mxu0 %vm1562_vm2, %v1561_v21  ;;  %1502 = vset.pattern.permute.xlu0 %v1573_v55 }
 0x29e   :  { %1189 = vperm.xlu1 %1497, %v1111_v49  }
 0x2a2   :  { %1499 = vset.pattern.permute.xlu1 %v1572_v53 }
 0x2a3   :  { %1200 = vperm.xlu1 %1499, %v1109_v44  }
 0x2a7   :  { %1208 = vperm.xlu1 %1499, %v1111_v49  }
 0x2ab   :  { %1501 = vset.pattern.permute.xlu1 %v1573_v55 }
 0x2ac   :  { %1227 = vperm.xlu1 %1501, %v1198_v57  }
 0x303   :  { %v1115_v3 = vpop.permute.xlu1 %1114 }
 0x304   :  { %v1120_v35 = vpop.permute.xlu0 %1119 }
 0x307   :  { %v1125_v4 = vpop.permute.xlu1 %1124 }
 0x35c   :  { %v980_v61 = vpop.f32.mrf.mxu0 }
 0x35d   :  { %v981_v62 = vadd.f32 %v980_v61, %v905_v60 }
 0x35e   :  { %v1432_v48 = vpop.f32.mrf.mxu0 }
 0x35f   :  { %v984_v58 = vsel %vm675_vm7, %v981_v62, 0.0 }
 0x360   :  { %v985_v36 = vrot.slane %v984_v58, 4 }
 0x362   :  { %v986_v50 = vadd.f32 %v985_v36, %v984_v58 }
 0x364   :  { %v987_v23 = vrot.slane %v986_v50, 2 }
 0x366   :  { %v988_v54 = vadd.f32 %v987_v23, %v986_v50 }
 0x368   :  { %v989_v29 = vrot.slane %v988_v54, 1 }
 0x36a   :  { %v990_v15 = vadd.f32 %v989_v29, %v988_v54 }
 0x36c   :  { %v991_v16 = vmul.f32 0.25, %v990_v15 }
 0x36e   :  { %v992_v6 = vsub.f32 %v981_v62, %v991_v16  ;;  %v1167_v16 = vpop.permute.xlu1 %1166 }
 0x370   :  { %v993_v1 = vmul.f32 %v992_v6, %v992_v6 }
 0x372   :  { %v994_v28 = vsel %vm675_vm7, %v993_v1, 0.0 }
 0x373   :  { %v995_v31 = vrot.slane %v994_v28, 4 }
 0x375   :  { %v996_v19 = vadd.f32 %v995_v31, %v994_v28  ;;  %v1175_v31 = vpop.permute.xlu1 %1174 }
 0x377   :  { %v997_v10 = vrot.slane %v996_v19, 2 }
 0x379   :  { %v998_v38 = vadd.f32 %v997_v10, %v996_v19  ;;  %v1182_v10 = vpop.permute.xlu1 %1181 }
 0x37b   :  { %v999_v52 = vrot.slane %v998_v38, 1 }
 0x37d   :  { %v1000_v8 = vadd.f32 %v999_v52, %v998_v38  ;;  %v1171_v38 = vpop.permute.xlu0 %1170  ;;  %v1190_v52 = vpop.permute.xlu1 %1189 }
 0x37f   :  { %v1001_v20 = vmul.f32 0.25, %v1000_v8 }
 0x381   :  { %v1002_v12 = vadd.f32 1e-05, %v1001_v20  ;;  %v1186_v20 = vpop.permute.xlu0 %1185 }
 0x383   :  { %1507 = vrsqrt.f32 %v1002_v12 }
 0x390   :  { %v1508_v56 = vpop.eup %1507 }
 0x391   :  { %v1004_v24 = vmul.f32 %v1508_v56, %v992_v6 }
 0x393   :  { %v1009_v25 = vmul.f32 %v1007_v7, %v1004_v24  ;;  %v1201_v24 = vpop.permute.xlu1 %1200 }
 0x395   :  { %v1014_v0 = vadd.f32 %v1012_v2, %v1009_v25 }
 0x397   :  { %v1015_v18 = vmax.f32 %v1014_v0, 0.0 }
 0x399   :  { %1434 = vmatpush3.msk.msra.mxu0 %vm90_vm0, %v1015_v18 }
 0x39a   :  { %1436 = vmatmul.mubr.msk.f32.vlgmr.msra.gmra.mxu0 %vm1016_vm9, %v56_v26 }
 0x39b   :  { %1438 = vmatprep.mubr.msk.f32.mxu0 %vm1562_vm2, %v1561_v21 }
 0x39e   :  { %1439 = vmatmul.mubr.msk.f32.gmra.mxu0 %vm1016_vm9, %v57_v32 }
 0x39f   :  { %1441 = vmatprep.mubr.msk.f32.mxu0 %vm1562_vm2, %v1561_v21 }
 0x3a2   :  { %1442 = vmatmul.mubr.msk.f32.gmra.mxu0 %vm1016_vm9, %v58_v27  ;;  %v1205_v27 = vpop.permute.xlu0 %1204 }
 0x45a   :  { %v1095_v33 = vpop.f32.mrf.mxu0 }
 0x45b   :  { %v1096_v14 = vadd.f32 %v1676_v47, %v1095_v33 }
 0x45c   :  { %v1437_v34 = vpop.f32.mrf.mxu0 }
 0x45d   :  { %v1127_v37 = vadd.f32 %v1115_v3, %v1096_v14  ;;  %v1209_v3 = vpop.permute.xlu1 %1208 }
 0x45e   :  { %v1100_v22 = vpop.f32.mrf.mxu0 }
 0x45f   :  { %v1101_v17 = vadd.f32 %v1100_v22, %v200_v59  ;;  %v1130_v21 = vsel %vm258_vm3, %v1127_v37, 0.0 }
 0x460   :  { %v1440_v30 = vpop.f32.mrf.mxu0 }
 0x461   :  { %v1128_v11 = vadd.f32 %v1120_v35, %v1101_v17 }
 0x462   :  { %v1105_v63 = vpop.f32.mrf.mxu0 }
 0x463   :  { %v1131_v39 = vsel %vm258_vm3, %v1128_v11, 0.0  ;;  %v1106_v41 = vadd.f32 %v1350_v5, %v1105_v63 }
 0x464   :  { %v1443_v13 = vpop.f32.mrf.mxu0  ;;  %v1132_v43 = vadd.f32 %v1131_v39, %v1130_v21 }
 0x465   :  { %v1129_v42 = vadd.f32 %v1125_v4, %v1106_v41 }
 0x467   :  { %v1133_v9 = vsel %vm258_vm3, %v1129_v42, 0.0 }
 0x468   :  { %v1134_v47 = vadd.f32 %v1133_v9, %v1132_v43  ;;  %v1228_v43 = vpop.permute.xlu1 %1227 }
 0x46a   :  { %v1135_v44 = vrot.slane %v1134_v47, 4 }
 0x46c   :  { %v1136_v45 = vadd.f32 %v1135_v44, %v1134_v47 }
 0x46e   :  { %v1137_v46 = vrot.slane %v1136_v45, 2 }
 0x470   :  { %v1138_v49 = vadd.f32 %v1137_v46, %v1136_v45 }
 0x472   :  { %v1139_v40 = vrot.slane %v1138_v49, 1 }
 0x474   :  { %v1140_v51 = vadd.f32 %v1139_v40, %v1138_v49 }
 0x476   :  { %v1141_v53 = vmul.f32 0.041666668, %v1140_v51 }
 0x478   :  { %v1143_v55 = vsub.f32 %v1128_v11, %v1141_v53  ;;  %v1144_v57 = vsub.f32 %v1129_v42, %v1141_v53  ;;  %v1142_v59 = vsub.f32 %v1127_v37, %v1141_v53 }
 0x47a   :  { %v1147_v5 = vmul.f32 %v1144_v57, %v1144_v57  ;;  %v1145_v60 = vmul.f32 %v1142_v59, %v1142_v59  ;;  %v1146_v61 = vmul.f32 %v1143_v55, %v1143_v55 }
 0x47c   :  { %v1148_v62 = vsel %vm258_vm3, %v1145_v60, 0.0  ;;  %v1149_v48 = vsel %vm258_vm3, %v1146_v61, 0.0  ;;  %v1151_v36 = vsel %vm258_vm3, %v1147_v5, 0.0 }
 0x47d   :  { %v1150_v58 = vadd.f32 %v1149_v48, %v1148_v62 }
 0x47f   :  { %v1152_v50 = vadd.f32 %v1151_v36, %v1150_v58 }
 0x481   :  { %v1153_v23 = vrot.slane %v1152_v50, 4 }
 0x483   :  { %v1154_v54 = vadd.f32 %v1153_v23, %v1152_v50 }
 0x485   :  { %v1155_v29 = vrot.slane %v1154_v54, 2 }
 0x487   :  { %v1156_v15 = vadd.f32 %v1155_v29, %v1154_v54 }
 0x489   :  { %v1157_v6 = vrot.slane %v1156_v15, 1 }
 0x48b   :  { %v1158_v1 = vadd.f32 %v1157_v6, %v1156_v15 }
 0x48d   :  { %v1159_v28 = vmul.f32 0.041666668, %v1158_v1 }
 0x48f   :  { %v1160_v19 = vadd.f32 1e-05, %v1159_v28 }
 0x491   :  { %1509 = vrsqrt.f32 %v1160_v19 }
 0x49e   :  { %v1510_v8 = vpop.eup %1509 }
 0x49f   :  { %v1162_v12 = vmul.f32 %v1510_v8, %v1142_v59  ;;  %v1164_v56 = vmul.f32 %v1510_v8, %v1144_v57  ;;  %v1163_v7 = vmul.f32 %v1510_v8, %v1143_v55 }
 0x4a1   :  { %v1177_v2 = vmul.f32 %v1167_v16, %v1162_v12  ;;  %v1179_v25 = vmul.f32 %v1175_v31, %v1164_v56  ;;  %v1178_v0 = vmul.f32 %v1171_v38, %v1163_v7 }
 0x4a3   :  { %v1192_v18 = vadd.f32 %v1182_v10, %v1177_v2  ;;  %v1194_v26 = vadd.f32 %v1190_v52, %v1179_v25  ;;  %v1193_v32 = vadd.f32 %v1186_v20, %v1178_v0 }
 0x4a5   :  { %v1195_v33 = vmax.f32 %v1192_v18, 0.0  ;;  %v1197_v34 = vmax.f32 %v1194_v26, 0.0  ;;  %v1196_v14 = vmax.f32 %v1193_v32, 0.0 }
 0x4a7   :  { %v1211_v22 = vmul.f32 %v1201_v24, %v1195_v33  ;;  %v1213_v35 = vmul.f32 %v1209_v3, %v1197_v34  ;;  %v1212_v17 = vmul.f32 %v1205_v27, %v1196_v14 }
 0x4a9   :  { %v1214_v30 = vsel %vm258_vm3, %v1211_v22, 0.0  ;;  %v1215_v37 = vsel %vm258_vm3, %v1212_v17, 0.0  ;;  %v1217_v63 = vsel %vm258_vm3, %v1213_v35, 0.0 }
 0x4aa   :  { %v1216_v11 = vadd.f32 %v1215_v37, %v1214_v30 }
 0x4ac   :  { %v1218_v39 = vadd.f32 %v1217_v63, %v1216_v11 }
 0x4ae   :  { %v1219_v41 = vrot.slane %v1218_v39, 4 }
 0x4b0   :  { %v1220_v4 = vadd.f32 %v1219_v41, %v1218_v39 }
 0x4b2   :  { %v1221_v13 = vrot.slane %v1220_v4, 2 }
 0x4b4   :  { %v1222_v21 = vadd.f32 %v1221_v13, %v1220_v4 }
 0x4b6   :  { %v1223_v42 = vrot.slane %v1222_v21, 1 }
 0x4b8   :  { %v1224_v9 = vadd.f32 %v1223_v42, %v1222_v21 }
 0x4ba   :  { %v1230_v47 = vadd.f32 %v1228_v43, %v1224_v9 }
 0x4bc   :  { %1232 = vst.msk [vmem:[#allocation5] sm:$0x1] %vm1231_vm10, %v1230_v47 }
 0x4bd   :  { %1542 = shalt.err (!%p1539_p9)
}
 0x4be   :  { %1242 = dma.vmem_to_hbm [thread:$0]  %s1240_s5, 16, %s2021_s3, [#allocation4]  }
 0x4bf   :  { %1553 = dma.done.wait [#allocation4], 16  }
 0x4c0   :  { %1554 = vsyncadd [#allocation4], 4294967280 }
 0x4c1   :  { %1246 = vsyncpa [#allocation3], 1 }
 0x4c2   :  { %1247 = vsyncpa [#allocation4], 1 }

</bundles_post_ra>
